<compile_context>
chip_gen: v7x
topology: tpu7x:2x2x1
jax: 0.10.0
libtpu: 0.0.40
codegen_flags: <defaults>
</compile_context>

<pallas_src>
import math
import functools
import numpy as np

import jax
import jax.numpy as jnp
from jax.experimental import pallas as pl
from jax.experimental.pallas import tpu as pltpu


# ----------------------------- host-side helpers -----------------------------

def position_encoding(d_model, length):
    if d_model % 2 != 0:
        raise ValueError("d_model must be even")
    pe = np.zeros((length, d_model), dtype=np.float32)
    position = np.arange(length, dtype=np.float32)[:, None]
    div_term = np.exp(
        np.arange(0, d_model, 2, dtype=np.float32) * -(math.log(10000.0) / d_model)
    )
    pe[:, 0::2] = np.sin(position * div_term)
    pe[:, 1::2] = np.cos(position * div_term)
    return pe


def triplane_coords(reso, padding):
    ar = np.arange(reso, dtype=np.float32)
    mid = (reso - 1) / 2.0
    X, Z = np.meshgrid(ar, ar, indexing="xy")
    xz = np.stack([X, np.full_like(X, mid), Z], axis=-1)
    X, Y = np.meshgrid(ar, ar, indexing="xy")
    xy = np.stack([X, Y, np.full_like(X, mid)], axis=-1)
    Y, Z = np.meshgrid(ar, ar, indexing="xy")
    yz = np.stack([np.full_like(Y, mid), Y, Z], axis=-1)
    coords = np.concatenate([xz, xy, yz], axis=0)  # (3*reso, reso, 3)
    coords = coords / (reso - 1)
    coords = (coords - 0.5) * 2.0 * (1.0 + padding + 1e-05)
    return coords.reshape(-1, 3).astype(np.float32)


def depth_interp_consts(n_img):
    # Static trilinear-interpolation constants along the image ("depth") axis of
    # grid_sample (align_corners=True, zeros padding).  Pure function of n_img.
    if n_img == 1:
        return ((0, 0, 0.0),)
    out = []
    for j in range(n_img):
        g = np.float32(j) / np.float32(n_img - 1)
        g = (g - np.float32(0.5)) * np.float32(2.0)
        g = np.float32(np.clip(g, -1.0, 1.0))
        zp = (g + np.float32(1.0)) * np.float32(0.5) * np.float32(n_img - 1)
        z0 = int(np.floor(zp))
        fz = float(np.float32(zp) - np.float32(z0))
        z1 = z0 + 1
        if z1 > n_img - 1:
            fz = 0.0
            z1 = n_img - 1
        z0 = min(max(z0, 0), n_img - 1)
        out.append((z0, z1, fz))
    return tuple(out)


def head_onehot(inner, n_heads):
    # (n_heads, inner) block-diagonal indicator: Ht[h, i] = 1 iff channel i is in head h.
    hd = inner // n_heads
    ch = np.arange(inner) // hd
    return (ch[None, :] == np.arange(n_heads)[:, None]).astype(np.float32)


def _block_bytes(shape, dtype):
    s = [int(d) for d in shape]
    while len(s) < 2:
        s.insert(0, 1)
    s[-1] = -(-s[-1] // 128) * 128
    s[-2] = -(-s[-2] // 8) * 8
    n = 1
    for d in s:
        n *= d
    return n * jnp.dtype(dtype).itemsize


def _vmem_limit_bytes(blocks):
    # double-buffered pipeline blocks + headroom for in-kernel intermediates
    need = 2 * sum(_block_bytes(s, d) for s, d in blocks) + (16 << 20)
    return int(min(max(need, 32 << 20), 96 << 20))


# --------------------------------- kernels -----------------------------------

_NT = (((1,), (1,)), ((), ()))   # contract the last dim of both operands (A @ B.T)


def kv_project_kernel(img_ref, wkv_ref, add_ref, kv_ref, *, mm_dtype):
    # img_ref block: (1, n_img*R^2, Cin).  Single fused matmul producing the
    # concatenated [k|v] maps with k/v Linear + image PE + MHA k/v in_proj folded in.
    x = img_ref[0]
    y = jnp.dot(x.astype(mm_dtype), wkv_ref[...].astype(mm_dtype),
                preferred_element_type=jnp.float32) + add_ref[...]
    kv_ref[0] = y.astype(kv_ref.dtype)


def fuse_attn_kernel(coords_ref, kv_ref, tri_ref, qadd_ref,
                     wqf_ref, bik_ref, biv_ref, ht_ref, wop_ref, bop_ref,
                     out_ref,
                     *, n_img, vit_reso, inner, n_heads, depth_consts, mm_dtype):
    R = vit_reso
    R2 = R * R
    hd = inner // n_heads
    scale = 1.0 / math.sqrt(hd)

    # fused q projection (q Linear + triplane PE + MHA q in_proj); scale applied once.
    qs = (jnp.dot(tri_ref[0].astype(mm_dtype), wqf_ref[...].astype(mm_dtype),
                  preferred_element_type=jnp.float32) + qadd_ref[...]) * scale

    # pixel-grid coordinates of the flattened R^2 ViT tokens, hoisted once.
    # cy = p // R, cx = p % R computed with float math only (no int div/mod).
    pf = jax.lax.broadcasted_iota(jnp.int32, (1, R2), 1).astype(jnp.float32)
    cyf = jnp.floor((pf + 0.5) * (1.0 / R))
    cxf = pf - cyf * R

    coords = coords_ref[0]     # (TN, 2*n_img): per image j -> (x, y) pixel coords
    ht = ht_ref[...]           # (n_heads, inner) head indicator
    bik = bik_ref[...]
    biv = biv_ref[...]

    m = l = acc = None
    for j in range(n_img):
        z0, z1, fz = depth_consts[j]
        xp = coords[:, 2 * j:2 * j + 1]          # (TN, 1)
        yp = coords[:, 2 * j + 1:2 * j + 2]

        # factored bilinear weights (triangle kernels).  Coordinates are clamped
        # to [0, R-1] on the host, so zeros-padding never triggers and this is
        # exactly the grid_sample bilinear weight matrix.
        wx = jnp.maximum(1.0 - jnp.abs(xp - cxf), 0.0)   # (TN, R^2)
        wy = jnp.maximum(1.0 - jnp.abs(yp - cyf), 0.0)
        wmat = wx * wy

        kvmap = kv_ref[0, pl.ds(z0 * R2, R2), :]         # (R^2, 2*inner)
        if fz != 0.0:  # static; dead for the standard depth grid (fz == 0)
            kvmap = ((1.0 - fz) * kvmap.astype(jnp.float32)
                     + fz * kv_ref[0, pl.ds(z1 * R2, R2), :].astype(jnp.float32))

        sampled = jnp.dot(wmat.astype(mm_dtype), kvmap.astype(mm_dtype),
                          preferred_element_type=jnp.float32)   # (TN, 2*inner)
        ka = sampled[:, :inner] + bik
        va = sampled[:, inner:] + biv

        # per-head scores for all heads at once: (TN, n_heads)
        s = jax.lax.dot_general(qs * ka, ht, _NT,
                                preferred_element_type=jnp.float32)

        if j == 0:
            # online-softmax init
            m, l, acc = s, jnp.ones_like(s), va
        else:
            # online-softmax update (flash-style); no k/v lists are kept live.
            m_new = jnp.maximum(m, s)
            alpha = jnp.exp(m - m_new)
            p = jnp.exp(s - m_new)
            l = alpha * l + p
            acc = (jnp.dot(alpha, ht, preferred_element_type=jnp.float32) * acc
                   + jnp.dot(p, ht, preferred_element_type=jnp.float32) * va)
            m = m_new

    inv = pl.reciprocal(l, approx=True)                         # EUP reciprocal
    attn = acc * jnp.dot(inv, ht, preferred_element_type=jnp.float32)   # (TN, inner)

    # fused MHA out_proj + 1x1 conv, emitted as a lane-dense (out_channels, TN) tile.
    out_t = jax.lax.dot_general(wop_ref[...].astype(mm_dtype), attn.astype(mm_dtype),
                                _NT, preferred_element_type=jnp.float32)
    out_ref[0] = (out_t + bop_ref[...]).astype(out_ref.dtype)


# --------------------------------- wrapper ------------------------------------

def multi_image_trifuse_sampler(params, triplane_feat, image_feat, proj_mat,
                                valid_frames, *, reso, vit_reso, padding,
                                inner_channel, n_heads, out_channels,
                                tile_n=None, matmul_dtype=jnp.float32):
    del valid_frames  # unused by the reference forward
    B, n_img = image_feat.shape[0], image_feat.shape[1]
    R2 = vit_reso * vit_reso
    N = 3 * reso * reso
    Cin = image_feat.shape[-1]
    C_tri = triplane_feat.shape[1]
    inner = inner_channel
    f32 = jnp.float32
    mm_dtype = jnp.dtype(matmul_dtype)
    kv_dtype = jnp.bfloat16 if mm_dtype == jnp.dtype(jnp.bfloat16) else f32

    # ---- one-time host-side weight fusions (parameter-only transforms) ----
    wk, bk, wv, bv = params["wk"], params["bk"], params["wv"], params["bv"]
    wq, bq = params["wq"], params["bq"]
    wiq, biq = params["wiq"], params["biq"]
    wik, bik = params["wik"], params["bik"]
    wiv, biv = params["wiv"], params["biv"]
    wo, bo, wproj, bproj = params["wo"], params["bo"], params["wproj"], params["bproj"]
    image_pe, triplane_pe = params["image_pe"], params["triplane_pe"]

    # k/v Linear + image PE with the MHA k/v in_proj folded in (linear ops commute
    # with the bilinear sampling matmul).
    w_kv = jnp.concatenate([wk @ wik, wv @ wiv], axis=1)                   # (Cin, 2*inner)
    add_kv = jnp.concatenate([image_pe @ wik + bk @ wik,
                              image_pe @ wiv + bv @ wiv], axis=1)          # (R^2, 2*inner)
    add_kv = jnp.tile(add_kv, (n_img, 1))                                  # (n_img*R^2, 2*inner)

    # q Linear + triplane PE with the MHA q in_proj folded in.
    w_qf = wq @ wiq                                                        # (C_tri, inner)
    q_add = triplane_pe @ wiq + (bq @ wiq + biq)                           # (N, inner)

    # MHA out_proj fused with the 1x1 conv, stored transposed for lane-dense output.
    w_op_t = (wo @ wproj).T                                                # (out_ch, inner)
    b_op_t = (bo @ wproj + bproj).T                                        # (out_ch, 1)

    ht = jnp.asarray(head_onehot(inner, n_heads))                          # (n_heads, inner)

    # ---- glue: drop CLS token, flatten all images to rows ----
    img = image_feat[:, :, 1:, :].reshape(B, n_img * R2, Cin)

    # ---- Kernel 1: fused k/v projection over all images of a batch ----
    k1_vmem = _vmem_limit_bytes([
        ((n_img * R2, Cin), f32), ((Cin, 2 * inner), f32),
        ((n_img * R2, 2 * inner), f32), ((n_img * R2, 2 * inner), kv_dtype)])
    kv = pl.pallas_call(
        functools.partial(kv_project_kernel, mm_dtype=mm_dtype),
        out_shape=jax.ShapeDtypeStruct((B, n_img * R2, 2 * inner), kv_dtype),
        grid=(B,),
        in_specs=[
            pl.BlockSpec((1, n_img * R2, Cin), lambda b: (b, 0, 0)),
            pl.BlockSpec((Cin, 2 * inner), lambda b: (0, 0)),
            pl.BlockSpec((n_img * R2, 2 * inner), lambda b: (0, 0)),
        ],
        out_specs=pl.BlockSpec((1, n_img * R2, 2 * inner), lambda b: (b, 0, 0)),
        compiler_params=pltpu.CompilerParams(
            dimension_semantics=("parallel",), vmem_limit_bytes=k1_vmem),
    )(img, w_kv, add_kv)

    # ---- glue: project triplane coords into each image (tiny einsum) ----
    coords = triplane_coords(reso, padding)                                # (N, 3)
    coords_homo = jnp.asarray(
        np.concatenate([coords, np.ones((N, 1), np.float32)], axis=-1))    # (N, 4)
    ci = jnp.einsum("nc,bjkc->bjnk", coords_homo, proj_mat)                # (B,n_img,N,4)
    x = ci[..., 0] / ci[..., 2]
    y = ci[..., 1] / ci[..., 2]
    x = x / (224.0 - 1.0)
    y = y / (224.0 - 1.0)
    gx = jnp.clip((x - 0.5) * 2.0, -1.0, 1.0)
    gy = jnp.clip((y - 0.5) * 2.0, -1.0, 1.0)
    xp = (gx + 1.0) * 0.5 * (vit_reso - 1)        # align_corners=True unnormalize
    yp = (gy + 1.0) * 0.5 * (vit_reso - 1)
    # pack (B, N, 2*n_img): N on the sublane axis (natural (TN,1) column slices),
    # all per-image coords on the lane axis (small padded width instead of 2->128).
    coords_pix = jnp.stack([xp, yp], axis=-1)                              # (B,n_img,N,2)
    coords_pix = jnp.transpose(coords_pix, (0, 2, 1, 3)).reshape(B, N, 2 * n_img)
    coords_pix = coords_pix.astype(jnp.float32)

    # ---- glue: triplane features to channels-last (B, N, C_tri) ----
    tri_flat = jnp.transpose(triplane_feat, (0, 2, 3, 1)).reshape(B, N, C_tri)

    # ---- tile size: as large as VMEM comfortably allows ----
    if tile_n is None:
        tile_n = N
        for cand in (1024, 512, 256, 128):
            if N % cand == 0:
                tile_n = cand
                break
    TN = tile_n
    assert N % TN == 0 and TN % 8 == 0 and (TN % 128 == 0 or TN == N)

    dcs = depth_interp_consts(n_img)
    kernel2 = functools.partial(
        fuse_attn_kernel, n_img=n_img, vit_reso=vit_reso, inner=inner,
        n_heads=n_heads, depth_consts=dcs, mm_dtype=mm_dtype)

    k2_vmem = _vmem_limit_bytes([
        ((TN, 2 * n_img), f32), ((n_img * R2, 2 * inner), kv_dtype),
        ((TN, C_tri), f32), ((TN, inner), f32), ((C_tri, inner), f32),
        ((1, inner), f32), ((1, inner), f32), ((n_heads, inner), f32),
        ((out_channels, inner), f32), ((out_channels, 1), f32),
        ((out_channels, TN), f32), ((TN, R2), f32), ((TN, 2 * inner), f32)])

    full = lambda b, nt: (0, 0)
    out_cn = pl.pallas_call(
        kernel2,
        out_shape=jax.ShapeDtypeStruct((B, out_channels, N), jnp.float32),
        grid=(B, N // TN),
        in_specs=[
            pl.BlockSpec((1, TN, 2 * n_img), lambda b, nt: (b, nt, 0)),
            pl.BlockSpec((1, n_img * R2, 2 * inner), lambda b, nt: (b, 0, 0)),
            pl.BlockSpec((1, TN, C_tri), lambda b, nt: (b, nt, 0)),
            pl.BlockSpec((TN, inner), lambda b, nt: (nt, 0)),
            pl.BlockSpec((C_tri, inner), full),
            pl.BlockSpec((1, inner), full),
            pl.BlockSpec((1, inner), full),
            pl.BlockSpec((n_heads, inner), full),
            pl.BlockSpec((out_channels, inner), full),
            pl.BlockSpec((out_channels, 1), full),
        ],
        out_specs=pl.BlockSpec((1, out_channels, TN), lambda b, nt: (b, 0, nt)),
        compiler_params=pltpu.CompilerParams(
            dimension_semantics=("parallel", "parallel"),
            vmem_limit_bytes=k2_vmem),
    )(coords_pix, kv, tri_flat, q_add, w_qf, bik, biv, ht, w_op_t, b_op_t)

    # ---- glue: already channel-major; just fold N back to (3*reso, reso) ----
    return out_cn.reshape(B, out_channels, 3 * reso, reso)


# ----------------------------------- main -------------------------------------

if __name__ == "__main__":
    # small, forward-consistent config
    reso = 8
    vit_reso = 8
    padding = 0.1
    triplane_in_channels = 16
    img_in_channels = 48
    inner_channel = 32
    out_channels = 16
    n_heads = 4
    max_nimg = 3
    n_img = max_nimg          # torch PE broadcast requires n_img == max_nimg
    B = 2
    N = 3 * reso * reso
    R2 = vit_reso * vit_reso

    key = jax.random.PRNGKey(0)
    ks = jax.random.split(key, 16)

    def lin(k, fin, fout, scale=0.05):
        kw, kb = jax.random.split(k)
        return (jax.random.normal(kw, (fin, fout), jnp.float32) * scale,
                jax.random.normal(kb, (1, fout), jnp.float32) * scale)

    wk, bk = lin(ks[0], img_in_channels, inner_channel)
    wv, bv = lin(ks[1], img_in_channels, inner_channel)
    wq, bq = lin(ks[2], triplane_in_channels, inner_channel)
    wiq, biq = lin(ks[3], inner_channel, inner_channel)
    wik, bik = lin(ks[4], inner_channel, inner_channel)
    wiv, biv = lin(ks[5], inner_channel, inner_channel)
    wo, bo = lin(ks[6], inner_channel, inner_channel)
    wproj, bproj = lin(ks[7], inner_channel, out_channels)

    params = dict(
        wk=wk, bk=bk, wv=wv, bv=bv, wq=wq, bq=bq,
        wiq=wiq, biq=biq, wik=wik, bik=bik, wiv=wiv, biv=biv,
        wo=wo, bo=bo, wproj=wproj, bproj=bproj,
        image_pe=jnp.asarray(position_encoding(inner_channel, R2)),
        triplane_pe=jnp.asarray(position_encoding(inner_channel, N)),
    )

    # inputs
    triplane_feat = jax.random.normal(
        ks[8], (B, triplane_in_channels, 3 * reso, reso), jnp.float32)
    image_feat = jax.random.normal(
        ks[9], (B, n_img, R2 + 1, img_in_channels), jnp.float32)

    # simple pinhole-like projection matrices (keep homogeneous w positive)
    base = np.zeros((4, 4), dtype=np.float32)
    base[0, 0] = 50.0; base[0, 3] = 112.0
    base[1, 1] = 50.0; base[1, 3] = 112.0
    base[2, 2] = 0.2;  base[2, 3] = 1.0
    base[3, 3] = 1.0
    jitter = np.asarray(
        jax.random.normal(ks[10], (B, n_img, 2, 4), jnp.float32)) * 1.0
    proj_np = np.broadcast_to(base, (B, n_img, 4, 4)).copy()
    proj_np[:, :, 0:2, :] += jitter
    proj_mat = jnp.asarray(proj_np, dtype=jnp.float32)

    valid_frames = jnp.ones((B, n_img), jnp.float32)

    out = multi_image_trifuse_sampler(
        params, triplane_feat, image_feat, proj_mat, valid_frames,
        reso=reso, vit_reso=vit_reso, padding=padding,
        inner_channel=inner_channel, n_heads=n_heads,
        out_channels=out_channels,
        # f32 keeps numerics exact vs. the reference; set matmul_dtype=jnp.bfloat16
        # on v6e/v7x for ~2x MXU throughput + half the kv HBM/VMEM footprint
        # (validate at ~1e-2 relative tolerance).
        matmul_dtype=jnp.float32)

    out = jax.block_until_ready(out)
    assert out.shape == (B, out_channels, 3 * reso, reso)
    assert bool(jnp.all(jnp.isfinite(out)))
    print("KERNEL_OK")
</pallas_src>

<mosaic_0001>
module attributes {stable_mosaic.version = 11 : i64} {
  func.func @kv_project_kernel(%arg0: i32, %arg1: memref<1x192x48xf32, #tpu.memory_space<vmem>>, %arg2: memref<48x64xf32, #tpu.memory_space<vmem>>, %arg3: memref<192x64xf32, #tpu.memory_space<vmem>>, %arg4: memref<1x192x64xf32, #tpu.memory_space<vmem>>) attributes {dimension_semantics = [#tpu.dimension_semantics<parallel>], iteration_bounds = array<i64: 2>, scalar_prefetch = 0 : i64, scratch_operands = 0 : i64, tpu.core_type = #tpu.core_type<tc>, window_params = [{transform_indices = @transform_0, window_bounds = array<i64: 1, 192, 48>}, {pipeline_mode = #tpu.pipeline_mode<synchronous>, transform_indices = @transform_1, window_bounds = array<i64: 48, 64>}, {pipeline_mode = #tpu.pipeline_mode<synchronous>, transform_indices = @transform_2, window_bounds = array<i64: 192, 64>}, {transform_indices = @transform_3, window_bounds = array<i64: 1, 192, 64>}]} {
    %c0 = arith.constant 0 : index
    %c0_0 = arith.constant 0 : index
    %c0_1 = arith.constant 0 : index
    %0 = vector.load %arg1[%c0, %c0_0, %c0_1] : memref<1x192x48xf32, #tpu.memory_space<vmem>>, vector<1x192x48xf32>
    %1 = vector.shape_cast %0 : vector<1x192x48xf32> to vector<192x48xf32>
    %c0_2 = arith.constant 0 : index
    %c0_3 = arith.constant 0 : index
    %2 = vector.load %arg2[%c0_2, %c0_3] : memref<48x64xf32, #tpu.memory_space<vmem>>, vector<48x64xf32>
    %cst = arith.constant dense<0.000000e+00> : vector<192x64xf32>
    %3 = tpu.matmul %1, %2, %cst {dimension_numbers = #tpu.dot_dimension_numbers<[1], [0], [0], [1], [0, 0, 1, 1], [], []>} : vector<192x48xf32>, vector<48x64xf32>, vector<192x64xf32> -> vector<192x64xf32>
    %c0_4 = arith.constant 0 : index
    %c0_5 = arith.constant 0 : index
    %4 = vector.load %arg3[%c0_4, %c0_5] : memref<192x64xf32, #tpu.memory_space<vmem>>, vector<192x64xf32>
    %5 = arith.addf %3, %4 : vector<192x64xf32>
    %c0_6 = arith.constant 0 : index
    %c0_7 = arith.constant 0 : index
    %c0_8 = arith.constant 0 : index
    %6 = vector.load %arg4[%c0_6, %c0_7, %c0_8] : memref<1x192x64xf32, #tpu.memory_space<vmem>>, vector<1x192x64xf32>
    %7 = vector.shape_cast %6 : vector<1x192x64xf32> to vector<192x64xf32>
    %8 = vector.shape_cast %5 : vector<192x64xf32> to vector<1x192x64xf32>
    tpu.vector_store %arg4[%c0_6, %c0_7, %c0_8], %8 {strides = array<i32>} : memref<1x192x64xf32, #tpu.memory_space<vmem>>, vector<1x192x64xf32>,
    return
  }
  func.func @transform_0(%arg0: i32) -> (i32, i32, i32) {
    %c0_i32 = arith.constant 0 : i32
    %c0_i32_0 = arith.constant 0 : i32
    %c0_i32_1 = arith.constant 0 : i32
    return %arg0, %c0_i32, %c0_i32_0 : i32, i32, i32
  }
  func.func @transform_1(%arg0: i32) -> (i32, i32) {
    %c0_i32 = arith.constant 0 : i32
    %c0_i32_0 = arith.constant 0 : i32
    %c0_i32_1 = arith.constant 0 : i32
    return %c0_i32, %c0_i32_0 : i32, i32
  }
  func.func @transform_2(%arg0: i32) -> (i32, i32) {
    %c0_i32 = arith.constant 0 : i32
    %c0_i32_0 = arith.constant 0 : i32
    %c0_i32_1 = arith.constant 0 : i32
    return %c0_i32, %c0_i32_0 : i32, i32
  }
  func.func @transform_3(%arg0: i32) -> (i32, i32, i32) {
    %c0_i32 = arith.constant 0 : i32
    %c0_i32_0 = arith.constant 0 : i32
    %c0_i32_1 = arith.constant 0 : i32
    return %arg0, %c0_i32, %c0_i32_0 : i32, i32, i32
  }
}

</mosaic_0001>

<bundles_post_ra>
// kernel: tpu_custom_call.1
= control target key start
LH: loop header
LB: loop body
LE: loop exit
PB: predicated region body
PF: predicated region fallthrough
CT: control target
= control target key end

     0   :  { %s729_s12 = smov 0   ;;  %s943_s0 = inlined_call_operand.vmem [shape: f32[2,192,48], index: 0, kind: input, shape index: {}]   ;;  %s944_s1 = inlined_call_operand.vmem [shape: f32[48,64], index: 1, kind: input, shape index: {}]   ;;  %s945_s2 = inlined_call_operand.vmem [shape: f32[192,64], index: 2, kind: input, shape index: {}]   ;;  %s946_s3 = inlined_call_operand.vmem [shape: f32[2,192,64], index: 3, kind: output, shape index: {}]  }
   0x1 LB: > { %s563_s13 = sadd.s32 4294967295, %s707_s12   ;;  %p567_p0 = scmp.ge.s32.totalorder %s707_s12, 1  ;;  %s707_s12 = sphi %s729_s12, %s13_s12  }
   0x2   : > { %p137_p1 = scmp.lt.s32.totalorder %s707_s12, 3 }
   0x4   : > { %p138_p2 = pnand %p567_p0, %p137_p1 }
   0x5   : > { %v195_v0 = vld [vmem:[%s944_s1] sm:$0xff] (!%p138_p2)  ;;  %v196_v1 = vld [vmem:[%s944_s1 + $0x8] sm:$0xff] (!%p138_p2)  ;;  %v197_v2 = vld [vmem:[%s944_s1 + $0x10] sm:$0xff] (!%p138_p2)  ;;  %p161_p3 = scmp.lt.s32.totalorder (!%p138_p2), %s563_s13, 1  ;;  %vm225_vm0 = vcmask (!%p138_p2), 392192   ;;  %vm483_vm1 = vcmask (!%p138_p2), 523264  }
   0x6   : > { %141 = sbr.rel (%p138_p2) target bundleno = 256 (0x100), region = 32  ;;  %v674_v3 = vpack.c.bf16 (!%p138_p2), %v196_v1, %v195_v0  ;;  %v198_v4 = vld [vmem:[%s944_s1 + $0x18] sm:$0xff] (!%p138_p2)  ;;  %v199_v6 = vld [vmem:[%s944_s1 + $0x20] sm:$0xff] (!%p138_p2)  ;;  %v200_v7 = vld [vmem:[%s944_s1 + $0x28] sm:$0xff] (!%p138_p2) }
   0x7   : > { %v678_v5 = vpack.c.bf16 (!%p138_p2), %v198_v4, %v197_v2  ;;  %v682_v8 = vpack.c.bf16 (!%p138_p2), %v200_v7, %v199_v6  ;;  %v202_v33 = vld [vmem:[%s945_s2 + $0x8] sm:$0xff] (!%p138_p2)  ;;  %v201_v35 = vld [vmem:[%s945_s2] sm:$0xff] (!%p138_p2)  ;;  %v204_v45 = vld [vmem:[%s945_s2 + $0x18] sm:$0xff] (!%p138_p2) }
   0x8   : > { %675 = vmatprep.subr.bf16.mxu0 (!%p138_p2), %v674_v3  ;;  %686 = vmatprep.subr.bf16.mxu1 (!%p138_p2), %v674_v3  ;;  %v214_v34 = vld [vmem:[%s945_s2 + $0x68] sm:$0xff] (!%p138_p2)  ;;  %v213_v36 = vld [vmem:[%s945_s2 + $0x60] sm:$0xff] (!%p138_p2)  ;;  %v216_v46 = vld [vmem:[%s945_s2 + $0x78] sm:$0xff] (!%p138_p2) }
   0x9   : > { %677 = vmatpush3.bf16.msra.mxu0 (!%p138_p2), %v674_v3  ;;  %689 = vmatpush3.bf16.msra.mxu1 (!%p138_p2), %v674_v3  ;;  %v203_v47 = vld [vmem:[%s945_s2 + $0x10] sm:$0xff] (!%p138_p2)  ;;  %v206_v57 = vld [vmem:[%s945_s2 + $0x28] sm:$0xff] (!%p138_p2)  ;;  %v205_v59 = vld [vmem:[%s945_s2 + $0x20] sm:$0xff] (!%p138_p2) }
   0xa   : > { %679 = vmatprep.subr.bf16.mxu0 (!%p138_p2), %v678_v5  ;;  %687 = vmatprep.subr.bf16.mxu1 (!%p138_p2), %v678_v5  ;;  %v215_v48 = vld [vmem:[%s945_s2 + $0x70] sm:$0xff] (!%p138_p2)  ;;  %v218_v58 = vld [vmem:[%s945_s2 + $0x88] sm:$0xff] (!%p138_p2)  ;;  %v217_v60 = vld [vmem:[%s945_s2 + $0x80] sm:$0xff] (!%p138_p2) }
   0xb   : > { %v220_v6 = vld [vmem:[%s945_s2 + $0x98] sm:$0xff] (!%p138_p2)  ;;  %v207_v7 = vld [vmem:[%s945_s2 + $0x30] sm:$0xff] (!%p138_p2) }
   0xd   : > { %s948_s13 = smov (!%p161_p3, %s563_s13), 1  ;;  %681 = vmatpush3.bf16.msra.mxu0 %v678_v5  ;;  %690 = vmatpush3.bf16.msra.mxu1 %v678_v5  ;;  %v208_v5 = vld [vmem:[%s945_s2 + $0x38] sm:$0xff] }
   0xe   : > { %s692_s26 = smul.u32 192, %s948_s13  ;;  %683 = vmatprep.subr.bf16.mxu0 %v682_v8  ;;  %688 = vmatprep.subr.bf16.mxu1 %v682_v8 }
  0x10   : > { %s763_s29 = scalar_lea.vmem %s943_s0, %s692_s26  ;;  %s830_s15 = scalar_lea.vmem %s946_s3, %s692_s26 }
  0x11   : > { %v171_v9 = vld [vmem:[%s763_s29] sm:$0xff]  ;;  %685 = vmatpush3.bf16.msra.mxu0 %v682_v8  ;;  %691 = vmatpush3.bf16.msra.mxu1 %v682_v8  ;;  %v172_v11 = vld [vmem:[%s763_s29 + $0x8] sm:$0xff]  ;;  %v173_v13 = vld [vmem:[%s763_s29 + $0x10] sm:$0xff] }
  0x12   : > { %v183_v10 = vld [vmem:[%s763_s29 + $0x60] sm:$0xff]  ;;  %638 = vmatprep.mubr.msk.f32.mxu0 %vm225_vm0, %v171_v9  ;;  %v184_v12 = vld [vmem:[%s763_s29 + $0x68] sm:$0xff]  ;;  %v185_v14 = vld [vmem:[%s763_s29 + $0x70] sm:$0xff] }
  0x13   : > { %656 = vmatprep.mubr.msk.f32.mxu1 %vm225_vm0, %v183_v10  ;;  %v174_v15 = vld [vmem:[%s763_s29 + $0x18] sm:$0xff]  ;;  %v175_v17 = vld [vmem:[%s763_s29 + $0x20] sm:$0xff]  ;;  %v176_v19 = vld [vmem:[%s763_s29 + $0x28] sm:$0xff] }
  0x14   : > { %639 = vmatmul.mubr.msk.f32.vlgmr.msra.gmra.mrb[0].mxu0 %vm225_vm0, %v172_v11  ;;  %657 = vmatmul.mubr.msk.f32.vlgmr.msra.gmra.mrb[0].mxu1 %vm225_vm0, %v184_v12  ;;  %v186_v16 = vld [vmem:[%s763_s29 + $0x78] sm:$0xff]  ;;  %v187_v18 = vld [vmem:[%s763_s29 + $0x80] sm:$0xff]  ;;  %v188_v20 = vld [vmem:[%s763_s29 + $0x88] sm:$0xff] }
  0x15   : > { %641 = vmatprep.mubr.msk.f32.mxu0 %vm225_vm0, %v173_v13  ;;  %659 = vmatprep.mubr.msk.f32.mxu1 %vm225_vm0, %v185_v14  ;;  %v177_v21 = vld [vmem:[%s763_s29 + $0x30] sm:$0xff]  ;;  %v178_v23 = vld [vmem:[%s763_s29 + $0x38] sm:$0xff]  ;;  %v179_v25 = vld [vmem:[%s763_s29 + $0x40] sm:$0xff] }
  0x16   : > { %v189_v22 = vld [vmem:[%s763_s29 + $0x90] sm:$0xff]  ;;  %v190_v24 = vld [vmem:[%s763_s29 + $0x98] sm:$0xff]  ;;  %v191_v26 = vld [vmem:[%s763_s29 + $0xa0] sm:$0xff] }
  0x17   : > { %v180_v27 = vld [vmem:[%s763_s29 + $0x48] sm:$0xff]  ;;  %v181_v29 = vld [vmem:[%s763_s29 + $0x50] sm:$0xff]  ;;  %v182_v31 = vld [vmem:[%s763_s29 + $0x58] sm:$0xff] }
  0x18   : > { %642 = vmatmul.mubr.msk.f32.gmra.mrb[2].mxu0 %vm225_vm0, %v174_v15  ;;  %660 = vmatmul.mubr.msk.f32.gmra.mrb[2].mxu1 %vm225_vm0, %v186_v16  ;;  %v192_v28 = vld [vmem:[%s763_s29 + $0xa8] sm:$0xff]  ;;  %v193_v30 = vld [vmem:[%s763_s29 + $0xb0] sm:$0xff]  ;;  %v194_v32 = vld [vmem:[%s763_s29 + $0xb8] sm:$0xff] }
  0x19   : > { %644 = vmatprep.mubr.msk.f32.mxu0 %vm225_vm0, %v175_v17  ;;  %662 = vmatprep.mubr.msk.f32.mxu1 %vm225_vm0, %v187_v18  ;;  %v219_v8 = vld [vmem:[%s945_s2 + $0x90] sm:$0xff]  ;;  %v210_v17 = vld [vmem:[%s945_s2 + $0x48] sm:$0xff] }
  0x1a   : > { %v222_v18 = vld [vmem:[%s945_s2 + $0xa8] sm:$0xff] }
  0x1c   : > { %645 = vmatmul.mubr.msk.f32.gmra.mrb[4].mxu0 %vm225_vm0, %v176_v19  ;;  %663 = vmatmul.mubr.msk.f32.gmra.mrb[4].mxu1 %vm225_vm0, %v188_v20  ;;  %v209_v19 = vld [vmem:[%s945_s2 + $0x40] sm:$0xff] }
  0x1d   : > { %647 = vmatprep.mubr.msk.f32.mxu0 %vm225_vm0, %v177_v21  ;;  %665 = vmatprep.mubr.msk.f32.mxu1 %vm225_vm0, %v189_v22  ;;  %v221_v20 = vld [vmem:[%s945_s2 + $0xa0] sm:$0xff] }
  0x20   : > { %648 = vmatmul.mubr.msk.f32.gmra.mrb[6].mxu0 %vm225_vm0, %v178_v23  ;;  %666 = vmatmul.mubr.msk.f32.gmra.mrb[6].mxu1 %vm225_vm0, %v190_v24 }
  0x21   : > { %650 = vmatprep.mubr.msk.f32.mxu0 %vm225_vm0, %v179_v25  ;;  %668 = vmatprep.mubr.msk.f32.mxu1 %vm225_vm0, %v191_v26 }
  0x24   : > { %651 = vmatmul.mubr.msk.f32.gmra.mrb[8].mxu0 %vm225_vm0, %v180_v27  ;;  %669 = vmatmul.mubr.msk.f32.gmra.mrb[8].mxu1 %vm225_vm0, %v192_v28 }
  0x25   : > { %653 = vmatprep.mubr.msk.f32.mxu0 %vm225_vm0, %v181_v29  ;;  %671 = vmatprep.mubr.msk.f32.mxu1 %vm225_vm0, %v193_v30  ;;  %v212_v29 = vld [vmem:[%s945_s2 + $0x58] sm:$0xff] }
  0x26   : > { %v224_v30 = vld [vmem:[%s945_s2 + $0xb8] sm:$0xff] }
  0x28   : > { %654 = vmatmul.mubr.msk.f32.gmra.mrb[10].mxu0 %vm225_vm0, %v182_v31  ;;  %672 = vmatmul.mubr.msk.f32.gmra.mrb[10].mxu1 %vm225_vm0, %v194_v32  ;;  %v211_v31 = vld [vmem:[%s945_s2 + $0x50] sm:$0xff] }
  0x29   : > { %v223_v32 = vld [vmem:[%s945_s2 + $0xb0] sm:$0xff] }
  0xe7   : > { %v640_v37 = vpop.f32.mrb[0].mxu0  ;;  %v658_v38 = vpop.f32.mrb[0].mxu1 }
  0xe8   : > { %v370_v39 = vadd.f32 %v640_v37, %v202_v33  ;;  %v430_v40 = vadd.f32 %v658_v38, %v214_v34  ;;  %v364_v41 = vpop.f32.mrb[1].mxu0  ;;  %v424_v42 = vpop.f32.mrb[1].mxu1 }
  0xe9   : > { %v365_v43 = vadd.f32 %v364_v41, %v201_v35  ;;  %v425_v44 = vadd.f32 %v424_v42, %v213_v36 }
  0xea   : > { %485 = vst.msk [vmem:[%s830_s15 + $0x8] sm:$0xff] %vm483_vm1, %v370_v39  ;;  %497 = vst.msk [vmem:[%s830_s15 + $0x68] sm:$0xff] %vm483_vm1, %v430_v40 }
  0xeb   : > { %484 = vst.msk [vmem:[%s830_s15] sm:$0xff] %vm483_vm1, %v365_v43  ;;  %496 = vst.msk [vmem:[%s830_s15 + $0x60] sm:$0xff] %vm483_vm1, %v425_v44  ;;  %v643_v49 = vpop.f32.mrb[2].mxu0  ;;  %v661_v50 = vpop.f32.mrb[2].mxu1 }
  0xec   : > { %v380_v51 = vadd.f32 %v643_v49, %v204_v45  ;;  %v440_v52 = vadd.f32 %v661_v50, %v216_v46  ;;  %v374_v53 = vpop.f32.mrb[3].mxu0  ;;  %v434_v54 = vpop.f32.mrb[3].mxu1 }
  0xed   : > { %v375_v55 = vadd.f32 %v374_v53, %v203_v47  ;;  %v435_v56 = vadd.f32 %v434_v54, %v215_v48 }
  0xee   : > { %487 = vst.msk [vmem:[%s830_s15 + $0x18] sm:$0xff] %vm483_vm1, %v380_v51  ;;  %499 = vst.msk [vmem:[%s830_s15 + $0x78] sm:$0xff] %vm483_vm1, %v440_v52 }
  0xef   : > { %486 = vst.msk [vmem:[%s830_s15 + $0x10] sm:$0xff] %vm483_vm1, %v375_v55  ;;  %498 = vst.msk [vmem:[%s830_s15 + $0x70] sm:$0xff] %vm483_vm1, %v435_v56  ;;  %v646_v61 = vpop.f32.mrb[4].mxu0  ;;  %v664_v62 = vpop.f32.mrb[4].mxu1 }
  0xf0   : > { %v390_v63 = vadd.f32 %v646_v61, %v206_v57  ;;  %v450_v0 = vadd.f32 %v664_v62, %v218_v58  ;;  %v384_v1 = vpop.f32.mrb[5].mxu0  ;;  %v444_v2 = vpop.f32.mrb[5].mxu1 }
  0xf1   : > { %v385_v3 = vadd.f32 %v384_v1, %v205_v59  ;;  %v445_v4 = vadd.f32 %v444_v2, %v217_v60 }
  0xf2   : > { %489 = vst.msk [vmem:[%s830_s15 + $0x28] sm:$0xff] %vm483_vm1, %v390_v63  ;;  %501 = vst.msk [vmem:[%s830_s15 + $0x88] sm:$0xff] %vm483_vm1, %v450_v0 }
  0xf3   : > { %488 = vst.msk [vmem:[%s830_s15 + $0x20] sm:$0xff] %vm483_vm1, %v385_v3  ;;  %500 = vst.msk [vmem:[%s830_s15 + $0x80] sm:$0xff] %vm483_vm1, %v445_v4  ;;  %v649_v9 = vpop.f32.mrb[6].mxu0  ;;  %v667_v10 = vpop.f32.mrb[6].mxu1 }
  0xf4   : > { %v400_v11 = vadd.f32 %v649_v9, %v208_v5  ;;  %v460_v12 = vadd.f32 %v667_v10, %v220_v6  ;;  %v394_v13 = vpop.f32.mrb[7].mxu0  ;;  %v454_v14 = vpop.f32.mrb[7].mxu1 }
  0xf5   : > { %v395_v15 = vadd.f32 %v394_v13, %v207_v7  ;;  %v455_v16 = vadd.f32 %v454_v14, %v219_v8 }
  0xf6   : > { %491 = vst.msk [vmem:[%s830_s15 + $0x38] sm:$0xff] %vm483_vm1, %v400_v11  ;;  %503 = vst.msk [vmem:[%s830_s15 + $0x98] sm:$0xff] %vm483_vm1, %v460_v12 }
  0xf7   : > { %490 = vst.msk [vmem:[%s830_s15 + $0x30] sm:$0xff] %vm483_vm1, %v395_v15  ;;  %502 = vst.msk [vmem:[%s830_s15 + $0x90] sm:$0xff] %vm483_vm1, %v455_v16  ;;  %v652_v21 = vpop.f32.mrb[8].mxu0  ;;  %v670_v22 = vpop.f32.mrb[8].mxu1 }
  0xf8   : > { %v410_v23 = vadd.f32 %v652_v21, %v210_v17  ;;  %v470_v24 = vadd.f32 %v670_v22, %v222_v18  ;;  %v404_v25 = vpop.f32.mrb[9].mxu0  ;;  %v464_v26 = vpop.f32.mrb[9].mxu1 }
  0xf9   : > { %v405_v27 = vadd.f32 %v404_v25, %v209_v19  ;;  %v465_v28 = vadd.f32 %v464_v26, %v221_v20 }
  0xfa   : > { %493 = vst.msk [vmem:[%s830_s15 + $0x48] sm:$0xff] %vm483_vm1, %v410_v23  ;;  %505 = vst.msk [vmem:[%s830_s15 + $0xa8] sm:$0xff] %vm483_vm1, %v470_v24 }
  0xfb   : > { %492 = vst.msk [vmem:[%s830_s15 + $0x40] sm:$0xff] %vm483_vm1, %v405_v27  ;;  %504 = vst.msk [vmem:[%s830_s15 + $0xa0] sm:$0xff] %vm483_vm1, %v465_v28  ;;  %v655_v33 = vpop.f32.mrb[10].mxu0  ;;  %v673_v34 = vpop.f32.mrb[10].mxu1 }
  0xfc   : > { %v420_v35 = vadd.f32 %v655_v33, %v212_v29  ;;  %v480_v36 = vadd.f32 %v673_v34, %v224_v30  ;;  %v414_v37 = vpop.f32.mrb[11].mxu0  ;;  %v474_v38 = vpop.f32.mrb[11].mxu1 }
  0xfd   : > { %v415_v39 = vadd.f32 %v414_v37, %v211_v31  ;;  %v475_v40 = vadd.f32 %v474_v38, %v223_v32 }
  0xfe   : > { %495 = vst.msk [vmem:[%s830_s15 + $0x58] sm:$0xff] %vm483_vm1, %v420_v35  ;;  %507 = vst.msk [vmem:[%s830_s15 + $0xb8] sm:$0xff] %vm483_vm1, %v480_v36 }
  0xff   : > { %494 = vst.msk [vmem:[%s830_s15 + $0x50] sm:$0xff] %vm483_vm1, %v415_v39  ;;  %506 = vst.msk [vmem:[%s830_s15 + $0xb0] sm:$0xff] %vm483_vm1, %v475_v40 }
 0x100 PF: > { %s13_s12 = sadd.s32 1, %s707_s12  }
 0x101   : > { %p10_p4 = scmp.ge.s32.totalorder %s13_s12, 4  }
 0x103   :  { %12 = sbr.rel (!%p10_p4) target bundleno = 1 (0x1), region = 62 }

</bundles_post_ra>
